<compile_context>
chip_gen: v5e
topology: v5e:2x2
jax: 0.10.0
libtpu: 0.0.40
codegen_flags: <defaults>
</compile_context>

<pallas_src>
import math
import functools

import jax
import jax.numpy as jnp
from jax import lax
from jax.experimental import pallas as pl
from jax.experimental.pallas import tpu as pltpu


def _embeddings_kernel(scale, ids_ref, table_ref, o_ref):
    """ids_ref: (BS, 1) int32; table_ref: (V, D) f32; o_ref: (BS, D) f32."""
    bs = ids_ref.shape[0]
    v = table_ref.shape[0]

    ids = ids_ref[...]                                           # (BS, 1) int32
    vocab_ids = lax.broadcasted_iota(jnp.int32, (bs, v), 1)      # (BS, V)

    # Scale folded into the one-hot: each row has exactly one nonzero == sqrt(D),
    # so onehot @ table == table[ids] * sqrt(D) with no extra VPU pass afterwards.
    onehot = jnp.where(ids == vocab_ids,
                       jnp.float32(scale), jnp.float32(0.0))     # (BS, V)

    # Gather-by-matmul on the (otherwise idle) MXU.  precision=HIGHEST keeps the
    # f32 table from being truncated to bf16 inside the MXU pipeline.
    emb = jnp.dot(onehot, table_ref[...],
                  preferred_element_type=jnp.float32,
                  precision=lax.Precision.HIGHEST)               # (BS, D) f32
    o_ref[...] = emb.astype(o_ref.dtype)


def embeddings(ids, table, d_model=None):
    """ids: (B, S) integer token ids, table: (V, D) f32  ->  (B, S, D) f32.

    Matches PyTorch's `lut(x) * sqrt(d_model)`.  NOTE: out-of-range ids
    (negative or >= V) produce all-zero embedding rows instead of raising.
    """
    assert ids.ndim == 2, f"ids must be (B, S), got shape {ids.shape}"
    assert table.ndim == 2, f"table must be (V, D), got shape {table.shape}"
    b, s = ids.shape
    v, d = table.shape
    if d_model is None:
        d_model = d
    scale = math.sqrt(d_model)
    bs = b * s

    ids_flat = ids.reshape(bs, 1).astype(jnp.int32)

    out = pl.pallas_call(
        functools.partial(_embeddings_kernel, scale),
        out_shape=jax.ShapeDtypeStruct((bs, d), table.dtype),
        # No grid: single invocation, whole arrays resident in VMEM — no
        # software-pipeline scaffolding for ~20 KiB of data.
        in_specs=[pl.BlockSpec(memory_space=pltpu.MemorySpace.VMEM),
                  pl.BlockSpec(memory_space=pltpu.MemorySpace.VMEM)],
        out_specs=pl.BlockSpec(memory_space=pltpu.MemorySpace.VMEM),
    )(ids_flat, table)
    return out.reshape(b, s, d)


def reference_embeddings(ids, table, d_model=None):
    """Pure-JAX reference mirroring the PyTorch forward exactly."""
    if d_model is None:
        d_model = table.shape[1]
    return table[ids] * math.sqrt(d_model)


if __name__ == "__main__":
    # Small, module-consistent toy shapes.
    V, D = 128, 32      # vocab size, d_model (vocab.word_embd.shape)
    B, S = 2, 8         # batch, sequence length of integer token ids

    k_ids, k_tab = jax.random.split(jax.random.PRNGKey(0))
    ids = jax.random.randint(k_ids, (B, S), 0, V, dtype=jnp.int32)
    # Stand-in for the pretrained vocab.word_embd weights.
    table = jax.random.normal(k_tab, (V, D), jnp.float32)

    out = embeddings(ids, table)
    out = jax.block_until_ready(out)

    ref = reference_embeddings(ids, table)
    assert out.shape == (B, S, D)
    assert jnp.allclose(out, ref, atol=1e-5, rtol=1e-5), "mismatch vs pure-JAX reference"
    print("KERNEL_OK")
</pallas_src>

<mosaic_0001>
module attributes {stable_mosaic.version = 11 : i64} {
  func.func @_embeddings_kernel(%arg0: memref<16x1xi32, #tpu.memory_space<vmem>>, %arg1: memref<128x32xf32, #tpu.memory_space<vmem>>, %arg2: memref<16x32xf32, #tpu.memory_space<vmem>>) attributes {dimension_semantics = [], scalar_prefetch = 0 : i64, scratch_operands = 0 : i64, tpu.core_type = #tpu.core_type<tc>} {
    %c0 = arith.constant 0 : index
    %c0_0 = arith.constant 0 : index
    %0 = vector.load %arg0[%c0, %c0_0] : memref<16x1xi32, #tpu.memory_space<vmem>>, vector<16x1xi32>
    %1 = tpu.iota {dimensions = array<i32: 1>} : vector<16x128xi32>
    %2 = vector.broadcast %0 : vector<16x1xi32> to vector<16x128xi32>
    %3 = arith.cmpi eq, %2, %1 : vector<16x128xi32>
    %cst = arith.constant 5.65685415 : f32
    %cst_1 = arith.constant 0.000000e+00 : f32
    %4 = vector.broadcast %cst : f32 to vector<16x128xf32>
    %5 = vector.broadcast %cst_1 : f32 to vector<16x128xf32>
    %6 = arith.select %3, %4, %5 : vector<16x128xi1>, vector<16x128xf32>
    %c0_2 = arith.constant 0 : index
    %c0_3 = arith.constant 0 : index
    %7 = vector.load %arg1[%c0_2, %c0_3] : memref<128x32xf32, #tpu.memory_space<vmem>>, vector<128x32xf32>
    %cst_4 = arith.constant dense<0.000000e+00> : vector<16x32xf32>
    %8 = tpu.matmul %6, %7, %cst_4 {dimension_numbers = #tpu.dot_dimension_numbers<[1], [0], [0], [1], [0, 0, 1, 1], [], []>, precision = #tpu.contract_precision<fp32>} : vector<16x128xf32>, vector<128x32xf32>, vector<16x32xf32> -> vector<16x32xf32>
    %c0_5 = arith.constant 0 : index
    %c0_6 = arith.constant 0 : index
    %9 = vector.load %arg2[%c0_5, %c0_6] : memref<16x32xf32, #tpu.memory_space<vmem>>, vector<16x32xf32>
    tpu.vector_store %arg2[%c0_5, %c0_6], %8 {strides = array<i32>} : memref<16x32xf32, #tpu.memory_space<vmem>>, vector<16x32xf32>,
    return
  }
}

</mosaic_0001>

<bundles_post_ra>
// kernel: tpu_custom_call.1
= control target key start
LH: loop header
LB: loop body
LE: loop exit
PB: predicated region body
PF: predicated region fallthrough
CT: control target
= control target key end

     0   :  { %v499_v2 = vmov 0   ;;  %s768_s0 = inlined_call_operand.vmem [shape: s32[16,1], index: 0, kind: input, shape index: {}]   ;;  %s769_s1 = inlined_call_operand.vmem [shape: f32[128,32], index: 1, kind: input, shape index: {}]   ;;  %s770_s2 = inlined_call_operand.hbm [shape: f32[16,32], index: 2, kind: output, shape index: {}]  }
   0x1   :  { %v12_v0 = vld [vmem:[%s768_s0] sm:$0xff]  ;;  %v41_v1 = vld [vmem:[%s769_s1 + $0x78] sm:$0xff]  ;;  %472 = vset.pattern.permute.xlu0 %v499_v2  ;;  %v40_v4 = vld [vmem:[%s769_s1 + $0x70] sm:$0xff] }
   0x2   :  { %v525_v3 = vand.u32 4294901760, %v41_v1  ;;  %v39_v5 = vld [vmem:[%s769_s1 + $0x68] sm:$0xff]  ;;  %v38_v6 = vld [vmem:[%s769_s1 + $0x60] sm:$0xff]  ;;  %17 = vperm.xlu0 %472, %v12_v0   ;;  %v536_v7 = vand.u32 4294901760, %v40_v4  ;;  %v37_v10 = vld [vmem:[%s769_s1 + $0x58] sm:$0xff] }
   0x3   :  { %v538_v8 = vand.u32 4294901760, %v39_v5  ;;  %v540_v9 = vand.u32 4294901760, %v38_v6  ;;  %v36_v11 = vld [vmem:[%s769_s1 + $0x50] sm:$0xff]  ;;  %v35_v12 = vld [vmem:[%s769_s1 + $0x48] sm:$0xff]  ;;  %v554_v14 = vand.u32 4294901760, %v37_v10  ;;  %v34_v17 = vld [vmem:[%s769_s1 + $0x40] sm:$0xff] }
   0x4   :  { %v92_v13 = vsub.f32 %v41_v1, %v525_v3  ;;  %256 = vmatpush.msra.mxu3 %v525_v3  ;;  %43 = vmatpush.msra.mxu0 %v525_v3  ;;  %v556_v15 = vand.u32 4294901760, %v36_v11  ;;  %v558_v16 = vand.u32 4294901760, %v35_v12  ;;  %v98_v18 = vsub.f32 %v40_v4, %v536_v7 }
   0x5   :  { %v104_v19 = vsub.f32 %v39_v5, %v538_v8  ;;  %v110_v20 = vsub.f32 %v38_v6, %v540_v9  ;;  %v566_v21 = vand.u32 4294901760, %v34_v17  ;;  %v116_v23 = vsub.f32 %v37_v10, %v554_v14 }
   0x6   :  { %v568_v22 = vand.u32 4294901760, %v92_v13  ;;  %198 = vmatpush.msra.mxu2 %v92_v13  ;;  %258 = vmatpush.msra.mxu3 %v536_v7  ;;  %v122_v24 = vsub.f32 %v36_v11, %v556_v15 }
   0x7   :  { %7 = vsyncpa [#allocation3], 0  ;;  %v573_v25 = vand.u32 4294901760, %v98_v18  ;;  %v575_v26 = vand.u32 4294901760, %v104_v19  ;;  %v577_v27 = vand.u32 4294901760, %v110_v20  ;;  %45 = vmatpush.msra.mxu0 %v536_v7  ;;  %v128_v28 = vsub.f32 %v35_v12, %v558_v16  ;;  %v13_v29 = vld [vmem:[%s768_s0 + $0x8] sm:$0xff] }
   0x8   :  { %v94_v30 = vsub.f32 %v92_v13, %v568_v22  ;;  %201 = vmatpush.msra.mxu2 %v98_v18  ;;  %v585_v31 = vand.u32 4294901760, %v116_v23  ;;  %260 = vmatpush.msra.mxu3 %v538_v8  ;;  %v134_v34 = vsub.f32 %v34_v17, %v566_v21  ;;  %v33_v35 = vld [vmem:[%s769_s1 + $0x38] sm:$0xff]  ;;  %v596_v38 = vand.u32 4294901760, %v122_v24  ;;  %v32_v39 = vld [vmem:[%s769_s1 + $0x30] sm:$0xff]  ;;  %v31_v40 = vld [vmem:[%s769_s1 + $0x28] sm:$0xff]  ;;  %s423_s19 = sshll.u32 %s770_s2, 4  ;;  %s424_s19 = int_to_ptr.hbm [resolvable:$true] %s423_s19 }
   0x9   :  { %v100_v32 = vsub.f32 %v98_v18, %v573_v25  ;;  %v106_v33 = vsub.f32 %v104_v19, %v575_v26  ;;  %47 = vmatpush.msra.mxu0 %v538_v8  ;;  %v112_v37 = vsub.f32 %v110_v20, %v577_v27  ;;  %v605_v42 = vand.u32 4294901760, %v128_v28  ;;  %v30_v43 = vld [vmem:[%s769_s1 + $0x20] sm:$0xff]  ;;  %v29_v50 = vld [vmem:[%s769_s1 + $0x18] sm:$0xff]  ;;  %v28_v57 = vld [vmem:[%s769_s1 + $0x10] sm:$0xff]  ;;  %s502_s20 = smov 128   ;;  %s503_s21 = smov 8  }
   0xa   :  { %v95_v36 = vand.u32 4294901760, %v94_v30  ;;  %204 = vmatpush.msra.mxu2 %v104_v19  ;;  %262 = vmatpush.msra.mxu3 %v540_v9  ;;  %v118_v45 = vsub.f32 %v116_v23, %v585_v31  ;;  %v612_v46 = vand.u32 4294901760, %v33_v35  ;;  %v615_v47 = vand.u32 4294901760, %v134_v34  ;;  %v27_v63 = vld [vmem:[%s769_s1 + $0x8] sm:$0xff]  ;;  %v26_v6 = vld [vmem:[%s769_s1] sm:$0xff]  ;;  %s501_s1 = smov [#allocation2]  }
   0xb   :  { %20 = vperm.xlu0 %472, %v13_v29   ;;  %v101_v41 = vand.u32 4294901760, %v100_v32  ;;  %49 = vmatpush.msra.mxu0 %v540_v9  ;;  %v107_v44 = vand.u32 4294901760, %v106_v33  ;;  %v618_v48 = vand.u32 4294901760, %v32_v39  ;;  %v620_v49 = vand.u32 4294901760, %v31_v40  ;;  %s421_s16 = sshll.u32 %s501_s1, 4  ;;  %s422_s16 = int_to_ptr.vmem [resolvable:$true] %s421_s16 }
   0xc   :  { %96 = vmatpush.msra.mxu1 %v95_v36  ;;  %207 = vmatpush.msra.mxu2 %v110_v20  ;;  %v113_v51 = vand.u32 4294901760, %v112_v37  ;;  %v124_v52 = vsub.f32 %v122_v24, %v596_v38  ;;  %v140_v53 = vsub.f32 %v33_v35, %v612_v46  ;;  %v627_v54 = vand.u32 4294901760, %v30_v43 }
   0xd   :  { %264 = vmatpush.msra.mxu3 %v554_v14  ;;  %51 = vmatpush.msra.mxu0 %v554_v14  ;;  %v130_v55 = vsub.f32 %v128_v28, %v605_v42  ;;  %v146_v56 = vsub.f32 %v32_v39, %v618_v48  ;;  %v119_v58 = vand.u32 4294901760, %v118_v45  ;;  %v152_v60 = vsub.f32 %v31_v40, %v620_v49 }
   0xe   :  { %102 = vmatpush.msra.mxu1 %v101_v41  ;;  %210 = vmatpush.msra.mxu2 %v116_v23  ;;  %v636_v59 = vand.u32 4294901760, %v140_v53  ;;  %v639_v61 = vand.u32 4294901760, %v29_v50  ;;  %v136_v62 = vsub.f32 %v134_v34, %v615_v47  ;;  %v125_v0 = vand.u32 4294901760, %v124_v52 }
   0xf   :  { %266 = vmatpush.msra.mxu3 %v556_v15  ;;  %53 = vmatpush.msra.mxu0 %v556_v15  ;;  %v647_v1 = vand.u32 4294901760, %v146_v56  ;;  %v158_v2 = vsub.f32 %v30_v43, %v627_v54  ;;  %v650_v4 = vand.u32 4294901760, %v28_v57  ;;  %v131_v5 = vand.u32 4294901760, %v130_v55 }
  0x10   :  { %108 = vmatpush.msra.mxu1 %v107_v44  ;;  %213 = vmatpush.msra.mxu2 %v122_v24  ;;  %v142_v10 = vsub.f32 %v140_v53, %v636_v59  ;;  %v658_v11 = vand.u32 4294901760, %v152_v60  ;;  %v164_v12 = vsub.f32 %v29_v50, %v639_v61  ;;  %v661_v13 = vand.u32 4294901760, %v27_v63 }
  0x11   :  { %268 = vmatpush.msra.mxu3 %v558_v16  ;;  %55 = vmatpush.msra.mxu0 %v558_v16  ;;  %v137_v17 = vand.u32 4294901760, %v136_v62  ;;  %v148_v18 = vsub.f32 %v146_v56, %v647_v1  ;;  %v666_v19 = vand.u32 4294901760, %v158_v2  ;;  %v170_v20 = vsub.f32 %v28_v57, %v650_v4 }
  0x12   :  { %114 = vmatpush.msra.mxu1 %v113_v51  ;;  %216 = vmatpush.msra.mxu2 %v128_v28  ;;  %v669_v23 = vand.u32 4294901760, %v26_v6  ;;  %v143_v24 = vand.u32 4294901760, %v142_v10  ;;  %v154_v28 = vsub.f32 %v152_v60, %v658_v11  ;;  %v674_v29 = vand.u32 4294901760, %v164_v12 }
  0x13   :  { %270 = vmatpush.msra.mxu3 %v566_v21  ;;  %57 = vmatpush.msra.mxu0 %v566_v21  ;;  %v176_v30 = vsub.f32 %v27_v63, %v661_v13  ;;  %v149_v32 = vand.u32 4294901760, %v148_v18  ;;  %v160_v33 = vsub.f32 %v158_v2, %v666_v19  ;;  %vm414_vm2 = vcmask 261120  }
  0x14   :  { %120 = vmatpush.msra.mxu1 %v119_v58  ;;  %219 = vmatpush.msra.mxu2 %v134_v34  ;;  %v680_v34 = vand.u32 4294901760, %v170_v20  ;;  %v182_v35 = vsub.f32 %v26_v6, %v669_v23  ;;  %v155_v36 = vand.u32 4294901760, %v154_v28  ;;  %v166_v37 = vsub.f32 %v164_v12, %v674_v29 }
  0x15   :  { %272 = vmatpush.msra.mxu3 %v612_v46  ;;  %59 = vmatpush.msra.mxu0 %v612_v46  ;;  %v686_v39 = vand.u32 4294901760, %v176_v30  ;;  %v161_v40 = vand.u32 4294901760, %v160_v33 }
  0x16   :  { %126 = vmatpush.msra.mxu1 %v125_v0  ;;  %222 = vmatpush.msra.mxu2 %v140_v53  ;;  %v172_v41 = vsub.f32 %v170_v20, %v680_v34  ;;  %v691_v43 = vand.u32 4294901760, %v182_v35  ;;  %v167_v44 = vand.u32 4294901760, %v166_v37 }
  0x17   :  { %274 = vmatpush.msra.mxu3 %v618_v48  ;;  %61 = vmatpush.msra.mxu0 %v618_v48  ;;  %v178_v45 = vsub.f32 %v176_v30, %v686_v39 }
  0x18   :  { %132 = vmatpush.msra.mxu1 %v131_v5  ;;  %225 = vmatpush.msra.mxu2 %v146_v56  ;;  %v173_v50 = vand.u32 4294901760, %v172_v41  ;;  %v184_v51 = vsub.f32 %v182_v35, %v691_v43 }
  0x19   :  { %276 = vmatpush.msra.mxu3 %v620_v49  ;;  %63 = vmatpush.msra.mxu0 %v620_v49  ;;  %v179_v52 = vand.u32 4294901760, %v178_v45 }
  0x1a   :  { %138 = vmatpush.msra.mxu1 %v137_v17  ;;  %228 = vmatpush.msra.mxu2 %v152_v60  ;;  %v185_v53 = vand.u32 4294901760, %v184_v51 }
  0x1b   :  { %278 = vmatpush.msra.mxu3 %v627_v54  ;;  %65 = vmatpush.msra.mxu0 %v627_v54 }
  0x1c   :  { %144 = vmatpush.msra.mxu1 %v143_v24  ;;  %231 = vmatpush.msra.mxu2 %v158_v2 }
  0x1d   :  { %280 = vmatpush.msra.mxu3 %v639_v61  ;;  %67 = vmatpush.msra.mxu0 %v639_v61 }
  0x1e   :  { %150 = vmatpush.msra.mxu1 %v149_v32  ;;  %234 = vmatpush.msra.mxu2 %v164_v12 }
  0x1f   :  { %282 = vmatpush.msra.mxu3 %v650_v4  ;;  %69 = vmatpush.msra.mxu0 %v650_v4 }
  0x20   :  { %156 = vmatpush.msra.mxu1 %v155_v36  ;;  %237 = vmatpush.msra.mxu2 %v170_v20 }
  0x21   :  { %284 = vmatpush.msra.mxu3 %v661_v13  ;;  %71 = vmatpush.msra.mxu0 %v661_v13 }
  0x22   :  { %162 = vmatpush.msra.mxu1 %v161_v40  ;;  %240 = vmatpush.msra.mxu2 %v176_v30 }
  0x23   :  { %286 = vmatpush.msra.mxu3 %v669_v23  ;;  %73 = vmatpush.msra.mxu0 %v669_v23 }
  0x24   :  { %168 = vmatpush.msra.mxu1 %v167_v44  ;;  %243 = vmatpush.msra.mxu2 %v182_v35 }
  0x25   :  { %451 = vmatpush.msrb.mxu3 %v525_v3  ;;  %303 = vmatpush.msrb.mxu0 %v568_v22 }
  0x26   :  { %435 = vmatpush.msrb.mxu2 %v568_v22  ;;  %174 = vmatpush.msra.mxu1 %v173_v50 }
  0x27   :  { %452 = vmatpush.msrb.mxu3 %v536_v7  ;;  %307 = vmatpush.msrb.mxu0 %v573_v25 }
  0x28   :  { %436 = vmatpush.msrb.mxu2 %v573_v25  ;;  %180 = vmatpush.msra.mxu1 %v179_v52 }
  0x29   :  { %453 = vmatpush.msrb.mxu3 %v538_v8  ;;  %311 = vmatpush.msrb.mxu0 %v575_v26 }
  0x2a   :  { %437 = vmatpush.msrb.mxu2 %v575_v26  ;;  %186 = vmatpush.msra.mxu1 %v185_v53 }
  0x2b   :  { %454 = vmatpush.msrb.mxu3 %v540_v9  ;;  %315 = vmatpush.msrb.mxu0 %v577_v27 }
  0x2c   :  { %374 = vmatpush.msrb.mxu1 %v525_v3  ;;  %438 = vmatpush.msrb.mxu2 %v577_v27  ;;  %v14_v3 = vlaneseq }
  0x2d   :  { %455 = vmatpush.msrb.mxu3 %v554_v14  ;;  %319 = vmatpush.msrb.mxu0 %v585_v31 }
  0x2e   :  { %376 = vmatpush.msrb.mxu1 %v536_v7  ;;  %439 = vmatpush.msrb.mxu2 %v585_v31  ;;  %v15_v7 = vand.u32 127, %v14_v3 }
  0x2f   :  { %456 = vmatpush.msrb.mxu3 %v556_v15  ;;  %323 = vmatpush.msrb.mxu0 %v596_v38 }
  0x30   :  { %378 = vmatpush.msrb.mxu1 %v538_v8  ;;  %440 = vmatpush.msrb.mxu2 %v596_v38 }
  0x31   :  { %457 = vmatpush.msrb.mxu3 %v558_v16  ;;  %327 = vmatpush.msrb.mxu0 %v605_v42 }
  0x32   :  { %380 = vmatpush.msrb.mxu1 %v540_v9  ;;  %441 = vmatpush.msrb.mxu2 %v605_v42  ;;  %v500_v9 = vmov 0.0  }
  0x33   :  { %458 = vmatpush.msrb.mxu3 %v566_v21  ;;  %331 = vmatpush.msrb.mxu0 %v615_v47 }
  0x34   :  { %382 = vmatpush.msrb.mxu1 %v554_v14  ;;  %442 = vmatpush.msrb.mxu2 %v615_v47 }
  0x35   :  { %459 = vmatpush.msrb.mxu3 %v612_v46  ;;  %335 = vmatpush.msrb.mxu0 %v636_v59 }
  0x36   :  { %384 = vmatpush.msrb.mxu1 %v556_v15  ;;  %443 = vmatpush.msrb.mxu2 %v636_v59 }
  0x37   :  { %460 = vmatpush.msrb.mxu3 %v618_v48  ;;  %339 = vmatpush.msrb.mxu0 %v647_v1 }
  0x38   :  { %386 = vmatpush.msrb.mxu1 %v558_v16  ;;  %444 = vmatpush.msrb.mxu2 %v647_v1 }
  0x39   :  { %461 = vmatpush.msrb.mxu3 %v620_v49  ;;  %343 = vmatpush.msrb.mxu0 %v658_v11 }
  0x3a   :  { %388 = vmatpush.msrb.mxu1 %v566_v21  ;;  %445 = vmatpush.msrb.mxu2 %v658_v11 }
  0x3b   :  { %462 = vmatpush.msrb.mxu3 %v627_v54  ;;  %347 = vmatpush.msrb.mxu0 %v666_v19 }
  0x3c   :  { %390 = vmatpush.msrb.mxu1 %v612_v46  ;;  %446 = vmatpush.msrb.mxu2 %v666_v19 }
  0x3d   :  { %463 = vmatpush.msrb.mxu3 %v639_v61  ;;  %351 = vmatpush.msrb.mxu0 %v674_v29 }
  0x3e   :  { %392 = vmatpush.msrb.mxu1 %v618_v48  ;;  %447 = vmatpush.msrb.mxu2 %v674_v29 }
  0x3f   :  { %464 = vmatpush.msrb.mxu3 %v650_v4  ;;  %355 = vmatpush.msrb.mxu0 %v680_v34 }
  0x40   :  { %394 = vmatpush.msrb.mxu1 %v620_v49  ;;  %448 = vmatpush.msrb.mxu2 %v680_v34 }
  0x41   :  { %465 = vmatpush.msrb.mxu3 %v661_v13  ;;  %359 = vmatpush.msrb.mxu0 %v686_v39 }
  0x42   :  { %396 = vmatpush.msrb.mxu1 %v627_v54  ;;  %449 = vmatpush.msrb.mxu2 %v686_v39 }
  0x43   :  { %466 = vmatpush.msrb.mxu3 %v669_v23  ;;  %363 = vmatpush.msrb.mxu0 %v691_v43 }
  0x44   :  { %398 = vmatpush.msrb.mxu1 %v639_v61  ;;  %450 = vmatpush.msrb.mxu2 %v691_v43 }
  0x46   :  { %400 = vmatpush.msrb.mxu1 %v650_v4 }
  0x48   :  { %402 = vmatpush.msrb.mxu1 %v661_v13 }
  0x4a   :  { %404 = vmatpush.msrb.mxu1 %v669_v23 }
  0x74   :  { %v18_v8 = vpop.permute.xlu0 %17 }
  0x75   :  { %vm22_vm0 = vcmp.eq.s32.totalorder %v18_v8, %v15_v7 }
  0x76   :  { %v24_v14 = vsel %vm22_vm0, 5.656854, %v500_v9 }
  0x77   :  { %v74_v15 = vand.u32 4294901760, %v24_v14 }
  0x79   :  { %v75_v16 = vsub.f32 %v24_v14, %v74_v15  ;;  %188 = vmatmul.f32.vlgmr.msra.gmra.mxu1 %v74_v15 }
  0x7b   :  { %246 = vmatmul.f32.vlgmr.msra.gmra.mxu2 %v75_v16  ;;  %v76_v21 = vand.u32 4294901760, %v75_v16 }
  0x7d   :  { %v21_v22 = vpop.permute.xlu0 %20  ;;  %290 = vmatmul.f32.vlgmr.msra.gmra.mxu3 %v76_v21  ;;  %v77_v25 = vsub.f32 %v75_v16, %v76_v21 }
  0x7e   :  { %vm23_vm1 = vcmp.eq.s32.totalorder %v21_v22, %v15_v7 }
  0x7f   :  { %v25_v26 = vsel %vm23_vm1, 5.656854, %v500_v9  ;;  %v78_v31 = vand.u32 4294901760, %v77_v25 }
  0x80   :  { %v82_v27 = vand.u32 4294901760, %v25_v26 }
  0x81   :  { %79 = vmatmul.f32.vlgmr.msra.gmra.mxu0 %v78_v31 }
  0x82   :  { %v83_v38 = vsub.f32 %v25_v26, %v82_v27  ;;  %192 = vmatmul.f32.gmra.mxu1 %v82_v27 }
  0x84   :  { %251 = vmatmul.f32.gmra.mxu2 %v83_v38  ;;  %v84_v42 = vand.u32 4294901760, %v83_v38 }
  0x86   :  { %296 = vmatmul.f32.gmra.mxu3 %v84_v42  ;;  %v85_v46 = vsub.f32 %v83_v38, %v84_v42 }
  0x88   :  { %v86_v47 = vand.u32 4294901760, %v85_v46 }
  0x8a   :  { %87 = vmatmul.f32.gmra.mxu0 %v86_v47  ;;  %406 = vmatmul.f32.vlgmr.msrb.gmra.mxu1 %v74_v15 }
  0x8c   :  { %369 = vmatmul.f32.vlgmr.msrb.gmra.mxu2 %v82_v27 }
  0x8e   :  { %410 = vmatmul.f32.vlgmr.msrb.gmra.mxu3 %v82_v27 }
  0x92   :  { %365 = vmatmul.f32.vlgmr.msrb.gmra.mxu0 %v74_v15 }
  0xf6   :  { %v189_v48 = vpop.f32.mrf.mxu1 }
  0xfe   :  { %v80_v49 = vpop.f32.mrf.mxu0  ;;  %v247_v54 = vpop.f32.mrf.mxu2 }
  0xff   :  { %v190_v56 = vadd.f32 %v189_v48, %v80_v49  ;;  %v193_v57 = vpop.f32.mrf.mxu1 }
 0x100   :  { %v291_v55 = vpop.f32.mrf.mxu3 }
 0x101   :  { %v248_v62 = vadd.f32 %v247_v54, %v190_v56 }
 0x103   :  { %v292_v0 = vadd.f32 %v291_v55, %v248_v62 }
 0x107   :  { %v88_v58 = vpop.f32.mrf.mxu0  ;;  %v252_v60 = vpop.f32.mrf.mxu2 }
 0x108   :  { %v194_v59 = vadd.f32 %v193_v57, %v88_v58  ;;  %v407_v6 = vpop.f32.mrf.mxu1 }
 0x109   :  { %v297_v61 = vpop.f32.mrf.mxu3 }
 0x10a   :  { %v253_v63 = vadd.f32 %v252_v60, %v194_v59 }
 0x10c   :  { %v298_v1 = vadd.f32 %v297_v61, %v253_v63 }
 0x10f   :  { %v366_v2 = vpop.f32.mrf.mxu0  ;;  %v370_v5 = vpop.f32.mrf.mxu2 }
 0x110   :  { %v367_v4 = vadd.f32 %v366_v2, %v292_v0  ;;  %v371_v10 = vadd.f32 %v370_v5, %v298_v1 }
 0x111   :  { %v411_v11 = vpop.f32.mrf.mxu3 }
 0x112   :  { %v408_v12 = vadd.f32 %v407_v6, %v367_v4  ;;  %v412_v13 = vadd.f32 %v411_v11, %v371_v10 }
 0x114   :  { %415 = vst.msk [vmem:[#allocation2] sm:$0xff] %vm414_vm2, %v408_v12 }
 0x115   :  { %416 = vst.msk [vmem:[#allocation2 + $0x8] sm:$0xff] %vm414_vm2, %v412_v13 }
 0x116   :  { %429 = dma.vmem_to_hbm [thread:$0]  %s422_s16, 256, %s424_s19, [#allocation3], %s502_s20, %s502_s20, %s503_s21  }
 0x117   :  { %497 = dma.done.wait [#allocation3], 256  }
 0x118   :  { %498 = vsyncadd [#allocation3], 4294967040 }
 0x119   :  { %434 = vsyncpa [#allocation3], 1 }

</bundles_post_ra>
